<compile_context>
chip_gen: v7x
topology: tpu7x:2x2x1
jax: 0.10.0
libtpu: 0.0.40
codegen_flags: <defaults>
</compile_context>

<pallas_src>
import math

import jax
import jax.numpy as jnp
from jax.experimental import pallas as pl
from jax.experimental.pallas import tpu as pltpu


def _round_up(x, m):
    return ((x + m - 1) // m) * m


def _affine_kernel(x_ref, s_ref, t_ref, y_ref):
    """Single fused affine y = S*x + T for one batch tile.

    x_ref: (Bt, Df) input tile
    s_ref: (1, Df)  effective scale  prod_k exp(a_k)            (replicated per step)
    t_ref: (1, Df)  effective shift  sum_k b_k * prod_{j>k} e^a (replicated per step)
    y_ref: (Bt, Df) output tile
    """
    y_ref[...] = s_ref[...] * x_ref[...] + t_ref[...]


def composite_transform_forward(x, a, b, *, max_block_bytes=4 * 1024 * 1024):
    """Forward pass of CompositeTransform (K composed affine-diagonal flows).

    Args:
      x: (batch, input_dim) inputs.
      a: (K, input_dim) log-scale parameters, one row per composed transform.
      b: (K, input_dim) shift parameters.
    Returns:
      (outputs, total_logabsdet), both (batch, input_dim).
    """
    B, D = x.shape
    K, _ = a.shape
    dtype = x.dtype
    elt = jnp.dtype(dtype).itemsize
    sublane = {4: 8, 2: 16, 1: 32}.get(elt, 8)

    # --- Param-only precompute on the tiny (K, D) arrays (free vs. the (B, D) streams).
    # Fold the K affines:  y = e^{a_{K-1}}(...(e^{a_0} x + b_0)...) + b_{K-1} = S*x + T
    a32 = a.astype(jnp.float32)
    b32 = b.astype(jnp.float32)
    suffix = jnp.cumsum(a32[::-1], axis=0)[::-1] - a32                 # sum_{j>k} a_j
    total_a = jnp.sum(a32, axis=0, keepdims=True)                      # (1, D)
    scale_row = jnp.exp(total_a).astype(dtype)                         # (1, D)  S
    shift_row = jnp.sum(b32 * jnp.exp(suffix), axis=0,
                        keepdims=True).astype(dtype)                   # (1, D)  T
    ld_row = total_a.astype(dtype)                                     # (1, D)  sum_k a_k

    # --- Lane-dense folding: make the last dim a multiple of 128 when D % 128 != 0.
    r = 1
    xk, Bk = x, B
    if D % 128 != 0:
        r_cand = 128 // math.gcd(D, 128)
        if B >= r_cand:                       # padding overhead bounded (< 2x)
            r = r_cand
            Bk = _round_up(B, r)
            if Bk != B:                       # only pad when folding needs it
                xk = jnp.pad(x, ((0, Bk - B), (0, 0)))
    Bf, Df = Bk // r, D * r
    xf = xk.reshape(Bf, Df)
    sf = jnp.tile(scale_row, (1, r)) if r > 1 else scale_row
    tf = jnp.tile(shift_row, (1, r)) if r > 1 else shift_row

    # --- Batch tile: VMEM-budgeted, dtype-aware sublane multiple, >= 2 grid steps
    #     when the batch allows it (so "parallel" can shard across v7x's 2 TCs and
    #     the BlockSpec pipeline has iterations to overlap).
    row_cap = max(sublane, (max_block_bytes // (Df * elt)) // sublane * sublane)
    if Bf <= sublane:
        row_tile = Bf                         # single full-batch block (full dim is legal)
    else:
        min_steps = 4 if Bf >= 4 * sublane else 2
        split_tile = _round_up(-(-Bf // min_steps), sublane)
        row_tile = max(sublane, min(row_cap, split_tile))
    grid = (pl.cdiv(Bf, row_tile),)           # ragged edge block masked by Pallas; no pad pass

    # --- VMEM budget derived from real usage: 2 streams (x, y) double-buffered + params.
    block_bytes = row_tile * Df * elt
    vmem_limit = 2 * 2 * block_bytes + 2 * 2 * Df * elt + (2 << 20)
    vmem_limit = int(max(vmem_limit, 16 << 20))

    yf = pl.pallas_call(
        _affine_kernel,
        out_shape=jax.ShapeDtypeStruct((Bf, Df), dtype),
        grid=grid,
        in_specs=[
            pl.BlockSpec((row_tile, Df), lambda i: (i, 0)),   # x: tiled over batch
            pl.BlockSpec((1, Df), lambda i: (0, 0)),          # S: replicated
            pl.BlockSpec((1, Df), lambda i: (0, 0)),          # T: replicated
        ],
        out_specs=pl.BlockSpec((row_tile, Df), lambda i: (i, 0)),
        compiler_params=pltpu.CompilerParams(
            dimension_semantics=("parallel",),                # shards across v7x's 2 TCs
            vmem_limit_bytes=vmem_limit,
        ),
    )(xf, sf, tf)

    # Undo lane folding (and the fold-only batch pad, if any).
    y = yf.reshape(Bk, D)
    if Bk != B:
        y = y[:B]
    # logabsdet is data-independent of x: broadcast the (1, D) row outside the kernel
    # (consumers that can use the row directly avoid materializing this at all).
    logabsdet = jnp.broadcast_to(ld_row, (B, D))
    return y, logabsdet


def _reference_forward(x, a, b):
    """Pure-JAX reference mirroring CompositeTransform._cascade."""
    out = x
    total_ld = jnp.zeros_like(x)
    for k in range(a.shape[0]):
        out = jnp.exp(a[k])[None, :] * out + b[k][None, :]
        total_ld = total_ld + jnp.broadcast_to(a[k][None, :], x.shape)
    return out, total_ld


if __name__ == "__main__":
    key = jax.random.PRNGKey(0)
    k_x, k_a, k_b = jax.random.split(key, 3)

    batch, input_dim, num_transforms = 16, 32, 3
    x = jax.random.normal(k_x, (batch, input_dim), dtype=jnp.float32)
    # Deterministic synthetic parameters for the K composed affine-diagonal transforms.
    a = 0.1 * jax.random.normal(k_a, (num_transforms, input_dim), dtype=jnp.float32)
    b = 0.1 * jax.random.normal(k_b, (num_transforms, input_dim), dtype=jnp.float32)

    y, logabsdet = composite_transform_forward(x, a, b)
    jax.block_until_ready((y, logabsdet))

    y_ref, ld_ref = _reference_forward(x, a, b)
    assert y.shape == (batch, input_dim) and logabsdet.shape == (batch, input_dim)
    assert jnp.allclose(y, y_ref, atol=1e-5, rtol=1e-5)
    assert jnp.allclose(logabsdet, ld_ref, atol=1e-5, rtol=1e-5)

    print("KERNEL_OK")
</pallas_src>

<mosaic_0001>
module attributes {stable_mosaic.version = 11 : i64} {
  func.func @_affine_kernel(%arg0: i32, %arg1: memref<4x128xf32, #tpu.memory_space<vmem>>, %arg2: memref<1x128xf32, #tpu.memory_space<vmem>>, %arg3: memref<1x128xf32, #tpu.memory_space<vmem>>, %arg4: memref<4x128xf32, #tpu.memory_space<vmem>>) attributes {dimension_semantics = [#tpu.dimension_semantics<parallel>], iteration_bounds = array<i64: 1>, scalar_prefetch = 0 : i64, scratch_operands = 0 : i64, tpu.core_type = #tpu.core_type<tc>, window_params = [{transform_indices = @transform_0, window_bounds = array<i64: 4, 128>}, {pipeline_mode = #tpu.pipeline_mode<synchronous>, transform_indices = @transform_1, window_bounds = array<i64: 1, 128>}, {pipeline_mode = #tpu.pipeline_mode<synchronous>, transform_indices = @transform_2, window_bounds = array<i64: 1, 128>}, {transform_indices = @transform_3, window_bounds = array<i64: 4, 128>}]} {
    %c0 = arith.constant 0 : index
    %c0_0 = arith.constant 0 : index
    %0 = vector.load %arg2[%c0, %c0_0] : memref<1x128xf32, #tpu.memory_space<vmem>>, vector<1x128xf32>
    %c0_1 = arith.constant 0 : index
    %c0_2 = arith.constant 0 : index
    %1 = vector.load %arg1[%c0_1, %c0_2] : memref<4x128xf32, #tpu.memory_space<vmem>>, vector<4x128xf32>
    %2 = vector.broadcast %0 : vector<1x128xf32> to vector<4x128xf32>
    %3 = arith.mulf %2, %1 : vector<4x128xf32>
    %c0_3 = arith.constant 0 : index
    %c0_4 = arith.constant 0 : index
    %4 = vector.load %arg3[%c0_3, %c0_4] : memref<1x128xf32, #tpu.memory_space<vmem>>, vector<1x128xf32>
    %5 = vector.broadcast %4 : vector<1x128xf32> to vector<4x128xf32>
    %6 = arith.addf %3, %5 : vector<4x128xf32>
    %c0_5 = arith.constant 0 : index
    %c0_6 = arith.constant 0 : index
    %7 = vector.load %arg4[%c0_5, %c0_6] : memref<4x128xf32, #tpu.memory_space<vmem>>, vector<4x128xf32>
    tpu.vector_store %arg4[%c0_5, %c0_6], %6 {strides = array<i32>} : memref<4x128xf32, #tpu.memory_space<vmem>>, vector<4x128xf32>,
    return
  }
  func.func @transform_0(%arg0: i32) -> (i32, i32) {
    %c0_i32 = arith.constant 0 : i32
    %c0_i32_0 = arith.constant 0 : i32
    return %arg0, %c0_i32 : i32, i32
  }
  func.func @transform_1(%arg0: i32) -> (i32, i32) {
    %c0_i32 = arith.constant 0 : i32
    %c0_i32_0 = arith.constant 0 : i32
    %c0_i32_1 = arith.constant 0 : i32
    return %c0_i32, %c0_i32_0 : i32, i32
  }
  func.func @transform_2(%arg0: i32) -> (i32, i32) {
    %c0_i32 = arith.constant 0 : i32
    %c0_i32_0 = arith.constant 0 : i32
    %c0_i32_1 = arith.constant 0 : i32
    return %c0_i32, %c0_i32_0 : i32, i32
  }
  func.func @transform_3(%arg0: i32) -> (i32, i32) {
    %c0_i32 = arith.constant 0 : i32
    %c0_i32_0 = arith.constant 0 : i32
    return %arg0, %c0_i32 : i32, i32
  }
}

</mosaic_0001>

<bundles_post_ra>
// kernel: tpu_custom_call.1
= control target key start
LH: loop header
LB: loop body
LE: loop exit
PB: predicated region body
PF: predicated region fallthrough
CT: control target
= control target key end

     0   :  { %8 = vsyncpa [#allocation3], 0  ;;  %s164_s0 = inlined_call_operand.hbm [shape: f32[4,128], index: 0, kind: input, shape index: {}]   ;;  %s165_s1 = inlined_call_operand.vmem [shape: f32[1,128], index: 1, kind: input, shape index: {}]   ;;  %s166_s2 = inlined_call_operand.vmem [shape: f32[1,128], index: 2, kind: input, shape index: {}]   ;;  %s167_s3 = inlined_call_operand.hbm [shape: f32[4,128], index: 3, kind: output, shape index: {}]  }
   0x1   :  { %9 = vsyncpa [#allocation4], 0  ;;  %s112_s12 = smov [#allocation2]   ;;  %s64_s16 = scalar_lea.hbm %s164_s0, 64 }
   0x2   :  { %s16_s13 = sshll.u32 %s112_s12, 4  ;;  %p65_p0 = scmp.ne.s32.totalorder %s164_s0, %s64_s16  ;;  %s17_s13 = int_to_ptr.vmem [resolvable:$true] %s16_s13 }
   0x3   :  { %p68_p1 = scmp.lt.u32.totalorder %s64_s16, %s164_s0 }
   0x5   :  { %p70_p2 = pnand %p68_p1, %p65_p0 }
   0x7   :  { %73 = shalt.err (!%p70_p2)
}
   0x8   :  { %s74_s21 = scalar_lea.vmem %s17_s13, 64  ;;  %p79_p4 = scmp.lt.s32.totalorder %s17_s13, %s17_s13 }
   0x9   :  { %p75_p3 = scmp.ne.s32.totalorder %s17_s13, %s74_s21  ;;  %p80_p5 = scmp.lt.s32.totalorder %s74_s21, %s74_s21 }
   0xb   :  { %p81_p6 = por %p80_p5, %p79_p4 }
   0xd   :  { %p82_p7 = pnand %p81_p6, %p75_p3 }
   0xf   :  { %85 = shalt.err (!%p82_p7)
}
  0x10   :  { %19 = dma.hbm_to_vmem [thread:$0]  %s164_s0, 64, %s17_s13, [#allocation3]  }
  0x11   :  { %108 = dma.done.wait [#allocation3], 64  }
  0x12   :  { %109 = vsyncadd [#allocation3], 4294967232  ;;  %s113_s24 = smov [#allocation5]   ;;  %v60_v0 = vld [vmem:[%s165_s1] ss:$0 sm:$0xff] }
  0x13   :  { %s51_s25 = sshll.u32 %s113_s24, 4  ;;  %v28_v1 = vld [vmem:[#allocation2] sm:$0xf]  ;;  %s52_s25 = int_to_ptr.vmem [resolvable:$true] %s51_s25 }
  0x14   :  { %v61_v2 = vld [vmem:[%s166_s2] ss:$0 sm:$0xff]  ;;  %v35_v3 = vmul.f32 %v60_v0, %v28_v1  ;;  %s86_s30 = scalar_lea.vmem %s52_s25, 64  ;;  %p91_p9 = scmp.lt.s32.totalorder %s52_s25, %s52_s25 }
  0x15   :  { %p87_p8 = scmp.ne.s32.totalorder %s52_s25, %s86_s30  ;;  %p92_p10 = scmp.lt.s32.totalorder %s86_s30, %s86_s30 }
  0x16   :  { %v43_v4 = vadd.f32 %v61_v2, %v35_v3 }
  0x17   :  { %p93_p11 = por %p92_p10, %p91_p9 }
  0x18   :  { %44 = vst [vmem:[#allocation5] sm:$0xf] %v43_v4 }
  0x19   :  { %p94_p12 = pnand %p93_p11, %p87_p8 }
  0x1b   :  { %97 = shalt.err (!%p94_p12)
}
  0x1c   :  { %s98_s1 = scalar_lea.hbm %s167_s3, 64 }
  0x1d   :  { %p99_p13 = scmp.ne.s32.totalorder %s167_s3, %s98_s1  ;;  %p102_p0 = scmp.lt.u32.totalorder %s98_s1, %s167_s3 }
  0x1f   :  { %p104_p1 = pnand %p102_p0, %p99_p13 }
  0x21   :  { %107 = shalt.err (!%p104_p1)
}
  0x22   :  { %54 = dma.vmem_to_hbm [thread:$0]  %s52_s25, 64, %s167_s3, [#allocation4]  }
  0x23   :  { %110 = dma.done.wait [#allocation4], 64  }
  0x24   :  { %111 = vsyncadd [#allocation4], 4294967232 }
  0x25   :  { %58 = vsyncpa [#allocation3], 1 }
  0x26   :  { %59 = vsyncpa [#allocation4], 1 }

</bundles_post_ra>
